<compile_context>
chip_gen: v5e
topology: v5e:2x2
jax: 0.10.0
libtpu: 0.0.40
codegen_flags: <defaults>
</compile_context>

<pallas_src>
import math
from functools import partial

import jax
import jax.numpy as jnp
from jax import lax
from jax.experimental import pallas as pl
from jax.experimental.pallas import tpu as pltpu


def _cdiv(a, b):
    return -(-a // b)


def _round_up(x, m):
    return ((x + m - 1) // m) * m


# -----------------------------------------------------------------------------
# Stage 1: patch-embed matmul + LayerNorm + streaming pooled sum.
# grid = (nsplit, N, T) with semantics ("parallel", "parallel", "arbitrary").
# The (8, C) output block per (split, image) is the accumulator itself.
# -----------------------------------------------------------------------------
def _pool_kernel(patch_ref, we_ref, lnp_ref, out_ref, *, n_patches, needs_mask):
    s = pl.program_id(0)
    t = pl.program_id(2)
    n_t = pl.num_programs(2)

    @pl.when(t == 0)
    def _init():
        out_ref[...] = jnp.zeros_like(out_ref)

    tp = patch_ref.shape[0]
    c = out_ref.shape[-1]

    # Patch-embed conv (kernel == stride) as a bf16 MXU matmul, f32 accumulation.
    emb = jnp.dot(patch_ref[...], we_ref[...],
                  preferred_element_type=jnp.float32)            # (tp, C) f32
    emb = emb + lnp_ref[0:1, :]                                  # conv bias

    # LayerNorm over channels, two-pass variance (numerically robust).
    mu = jnp.mean(emb, axis=-1, keepdims=True)
    xc = emb - mu
    var = jnp.mean(xc * xc, axis=-1, keepdims=True)
    emb = xc * lax.rsqrt(var + 1e-5)
    emb = emb * lnp_ref[1:2, :] + lnp_ref[2:3, :]

    if needs_mask:
        # Rows beyond the true patch count (padded / clamped-duplicate blocks)
        # are zeroed before accumulation.
        start = (s * n_t + t) * tp
        rows = start + lax.broadcasted_iota(jnp.int32, (tp, 1), 0)
        emb = jnp.where(rows < n_patches, emb, 0.0)

    # Sublane-partial pooled sum: pure VPU adds per step; the cross-sublane
    # reduce happens once in the head kernel.
    out_ref[...] += jnp.sum(emb.reshape(tp // 8, 8, c), axis=0)


# -----------------------------------------------------------------------------
# Stage 2: combine partial pooled sums and run the VQAHead (eval: dropout = id).
# -----------------------------------------------------------------------------
def _head_kernel(part_ref, wh_ref, bh_ref, wl_ref, bl_ref, out_ref, *, inv_np):
    pooled = jnp.sum(part_ref[...], axis=0)                      # (N, 8, C)
    pooled = jnp.sum(pooled, axis=1) * inv_np                    # (N, C)
    h = jnp.dot(pooled, wh_ref[...],
                preferred_element_type=jnp.float32) + bh_ref[...]
    h = 0.5 * h * (1.0 + lax.erf(h * (1.0 / math.sqrt(2.0))))    # exact GELU
    sc = jnp.dot(h, wl_ref[...],
                 preferred_element_type=jnp.float32) + bl_ref[...]  # (N, 1)
    # Lane-dense (unmasked) store of the per-image score.
    out_ref[...] = jnp.broadcast_to(sc, out_ref.shape).astype(out_ref.dtype)


# -----------------------------------------------------------------------------
# Layout helpers (run inside the jitted wrapper; XLA fuses them).
# -----------------------------------------------------------------------------
def _flatten_conv_weight(w_conv):
    # Conv3d weight (C_out, C_in, kt, kh, kw) -> (kt*kh*kw*C_in, C_out),
    # rows ordered (kt, kh, kw, c_in) to match the NTHWC im2col below.
    cout = w_conv.shape[0]
    return jnp.transpose(w_conv, (2, 3, 4, 1, 0)).reshape(-1, cout)


def _im2col_nthwc(x_nthwc, pt, ps):
    n, t, h, w, c = x_nthwc.shape
    tt, hh, ww = t // pt, h // ps, w // ps
    x = x_nthwc.reshape(n, tt, pt, hh, ps, ww, ps, c)
    x = x.transpose(0, 1, 3, 5, 2, 4, 6, 7)      # (n, tt, hh, ww, pt, ps, ps, c)
    return x.reshape(n, tt * hh * ww, pt * ps * ps * c), tt * hh * ww


@partial(jax.jit, static_argnames=("patch_t", "patch_s", "nsplit", "tile_rows"))
def base_evaluator(vclip, params, patch_t=2, patch_s=4, nsplit=2, tile_rows=None):
    n = vclip.shape[0]
    cout = params["w_conv"].shape[0]
    hid = params["w_hid"].shape[-1]

    # NCTHW -> NTHWC so the fused im2col transpose moves (ps, c)-contiguous runs;
    # stream the dominant operand as bf16 (f32 accumulation on the MXU).
    x = jnp.transpose(vclip, (0, 2, 3, 4, 1))
    patches, n_patches = _im2col_nthwc(x, patch_t, patch_s)
    patches = patches.astype(jnp.bfloat16)
    dp = patches.shape[-1]

    w_embed = _flatten_conv_weight(params["w_conv"]).astype(jnp.bfloat16)
    ln_pack = jnp.zeros((8, cout), jnp.float32)
    ln_pack = ln_pack.at[0].set(params["b_embed"])
    ln_pack = ln_pack.at[1].set(params["ln_gamma"])
    ln_pack = ln_pack.at[2].set(params["ln_beta"])

    # ---- tiling: core-split of the patch axis + big (~2 MiB) bf16 tiles.
    nsplit_eff = max(1, min(nsplit, n_patches // 16))
    if tile_rows is None:
        target = max(16, (2 * 1024 * 1024) // (dp * 2))        # ~2 MiB per tile
    else:
        target = max(16, tile_rows)
    tp = min(_round_up(target, 16), _round_up(_cdiv(n_patches, nsplit_eff), 16))
    n_tiles = _cdiv(n_patches, nsplit_eff * tp)                # tiles per split
    last_blk = _cdiv(n_patches, tp) - 1
    needs_clamp = (nsplit_eff * n_tiles - 1) > last_blk
    needs_mask = (nsplit_eff * n_tiles * tp) != n_patches

    def patch_map(s, i, t):
        blk = s * n_tiles + t
        if needs_clamp:                       # fully-OOB blocks are clamped and
            blk = jnp.minimum(blk, last_blk)  # zeroed by the in-kernel row mask
        return (i, blk, 0)

    tile_bytes = tp * dp * 2
    vmem_limit = int(min(48 * 1024 * 1024,
                         max(32 * 1024 * 1024, 4 * tile_bytes + (4 << 20))))

    partials = pl.pallas_call(
        partial(_pool_kernel, n_patches=n_patches, needs_mask=needs_mask),
        out_shape=jax.ShapeDtypeStruct((nsplit_eff, n, 8, cout), jnp.float32),
        grid=(nsplit_eff, n, n_tiles),
        in_specs=[
            pl.BlockSpec((None, tp, dp), patch_map),                     # patches
            pl.BlockSpec((dp, cout), lambda s, i, t: (0, 0)),            # w_embed
            pl.BlockSpec((8, cout), lambda s, i, t: (0, 0)),             # b/gamma/beta
        ],
        out_specs=pl.BlockSpec((None, None, 8, cout),
                               lambda s, i, t: (s, i, 0, 0)),
        compiler_params=pltpu.CompilerParams(
            dimension_semantics=("parallel", "parallel", "arbitrary"),
            vmem_limit_bytes=vmem_limit),
        cost_estimate=pl.CostEstimate(
            flops=int(2 * n * n_patches * dp * cout + 10 * n * n_patches * cout),
            transcendentals=0,
            bytes_accessed=int(n * n_patches * dp * 2 + dp * cout * 2
                               + nsplit_eff * n * 8 * cout * 4)),
    )(patches, w_embed, ln_pack)

    # ---- tiny finalize kernel: combine splits/sublanes, average, run VQAHead.
    b_hid = params["b_hid"].reshape(1, hid)
    b_last = params["b_last"].reshape(1, 1)
    scores = pl.pallas_call(
        partial(_head_kernel, inv_np=1.0 / float(n_patches)),
        out_shape=jax.ShapeDtypeStruct((n, 128), jnp.float32),
        grid=(1,),
        in_specs=[
            pl.BlockSpec((nsplit_eff, n, 8, cout), lambda i: (0, 0, 0, 0)),
            pl.BlockSpec((cout, hid), lambda i: (0, 0)),
            pl.BlockSpec((1, hid), lambda i: (0, 0)),
            pl.BlockSpec((hid, 1), lambda i: (0, 0)),
            pl.BlockSpec((1, 1), lambda i: (0, 0)),
        ],
        out_specs=pl.BlockSpec((n, 128), lambda i: (0, 0)),
    )(partials, params["w_hid"], b_hid, params["w_last"], b_last)

    return scores[:, :1]                                          # (N, 1)


# -----------------------------------------------------------------------------
# Pure-JAX reference (same math, matching bf16 rounding of the big operands).
# -----------------------------------------------------------------------------
def _reference(vclip, params, patch_t=2, patch_s=4):
    x = jnp.transpose(vclip, (0, 2, 3, 4, 1))
    patches, _ = _im2col_nthwc(x, patch_t, patch_s)
    w = _flatten_conv_weight(params["w_conv"])
    xb = patches.astype(jnp.bfloat16).astype(jnp.float32)
    wb = w.astype(jnp.bfloat16).astype(jnp.float32)
    emb = xb @ wb + params["b_embed"][None, None, :]
    mu = emb.mean(-1, keepdims=True)
    xc = emb - mu
    var = (xc * xc).mean(-1, keepdims=True)
    emb = xc * lax.rsqrt(var + 1e-5) * params["ln_gamma"] + params["ln_beta"]
    feat = emb.mean(axis=1)                                       # (N, C)
    h = feat @ params["w_hid"] + params["b_hid"][None, :]
    h = 0.5 * h * (1.0 + lax.erf(h / math.sqrt(2.0)))
    return h @ params["w_last"] + params["b_last"][None, :]


def init_params(key, c_in=3, patch_t=2, patch_s=4, embed_dim=32, hidden=16):
    dp = c_in * patch_t * patch_s * patch_s
    ks = jax.random.split(key, 6)

    def u(k, shape, fan_in):
        b = 1.0 / math.sqrt(fan_in)
        return jax.random.uniform(k, shape, jnp.float32, -b, b)

    return {
        # patch-embed Conv3d(c_in, embed_dim, k=(pt,ps,ps), s=(pt,ps,ps))
        "w_conv": u(ks[0], (embed_dim, c_in, patch_t, patch_s, patch_s), dp),
        "b_embed": u(ks[1], (embed_dim,), dp),
        "ln_gamma": jnp.ones((embed_dim,), jnp.float32),
        "ln_beta": jnp.zeros((embed_dim,), jnp.float32),
        # VQAHead: 1x1x1 convs == Linear(embed_dim, hidden), Linear(hidden, 1)
        "w_hid": u(ks[2], (embed_dim, hidden), embed_dim),
        "b_hid": u(ks[3], (hidden,), embed_dim),
        "w_last": u(ks[4], (hidden, 1), hidden),
        "b_last": u(ks[5], (1,), hidden),
    }


if __name__ == "__main__":
    key = jax.random.PRNGKey(0)
    k_img, k_par = jax.random.split(key)

    # NCTHW clip: batch=2, channels=3, 8 frames, 32x32 spatial, patch (2,4,4)
    # -> 256 patches/image, dp = 2*4*4*3 = 96, embed_dim C = 32.
    vclip = jax.random.normal(k_img, (2, 3, 8, 32, 32), jnp.float32)
    params = init_params(k_par)

    ref = _reference(vclip, params)

    # Default config: one big tile per (core-split, image), no masking needed.
    s_big = jax.block_until_ready(base_evaluator(vclip, params))
    # Stress config: multiple tiles per split + masked & clamped trailing tile.
    s_small = jax.block_until_ready(base_evaluator(vclip, params, tile_rows=96))

    assert s_big.shape == (2, 1) and s_small.shape == (2, 1)
    assert jnp.allclose(s_big, ref, atol=5e-3, rtol=5e-3), (s_big, ref)
    assert jnp.allclose(s_small, ref, atol=5e-3, rtol=5e-3), (s_small, ref)
    print("KERNEL_OK")
</pallas_src>

<mosaic_0001>
module attributes {stable_mosaic.version = 11 : i64} {
  func.func @_pool_kernel(%arg0: i32, %arg1: i32, %arg2: i32, %arg3: memref<1x128x96xbf16, #tpu.memory_space<vmem>>, %arg4: memref<96x32xbf16, #tpu.memory_space<vmem>>, %arg5: memref<8x32xf32, #tpu.memory_space<vmem>>, %arg6: memref<1x1x8x32xf32, #tpu.memory_space<vmem>>) attributes {dimension_semantics = [#tpu.dimension_semantics<parallel>, #tpu.dimension_semantics<parallel>, #tpu.dimension_semantics<arbitrary>], iteration_bounds = array<i64: 2, 2, 1>, scalar_prefetch = 0 : i64, scratch_operands = 0 : i64, tpu.core_type = #tpu.core_type<tc>, window_params = [{transform_indices = @transform_0, window_bounds = array<i64: 1, 128, 96>}, {pipeline_mode = #tpu.pipeline_mode<synchronous>, transform_indices = @transform_1, window_bounds = array<i64: 96, 32>}, {pipeline_mode = #tpu.pipeline_mode<synchronous>, transform_indices = @transform_2, window_bounds = array<i64: 8, 32>}, {transform_indices = @transform_3, window_bounds = array<i64: 1, 1, 8, 32>}]} {
    %c0_i32 = arith.constant 0 : i32
    %0 = arith.cmpi eq, %arg2, %c0_i32 : i32
    %1 = arith.extui %0 : i1 to i32
    %c0_i32_0 = arith.constant 0 : i32
    %2 = arith.cmpi ne, %1, %c0_i32_0 : i32
    scf.if %2 {
      %cst_23 = arith.constant 0.000000e+00 : f32
      %40 = vector.broadcast %cst_23 : f32 to vector<8x32xf32>
      %c0_24 = arith.constant 0 : index
      %c0_25 = arith.constant 0 : index
      %c0_26 = arith.constant 0 : index
      %c0_27 = arith.constant 0 : index
      %41 = vector.load %arg6[%c0_24, %c0_25, %c0_26, %c0_27] : memref<1x1x8x32xf32, #tpu.memory_space<vmem>>, vector<1x1x8x32xf32>
      %42 = vector.shape_cast %41 : vector<1x1x8x32xf32> to vector<8x32xf32>
      %43 = vector.shape_cast %40 : vector<8x32xf32> to vector<1x1x8x32xf32>
      tpu.vector_store %arg6[%c0_24, %c0_25, %c0_26, %c0_27], %43 {strides = array<i32>} : memref<1x1x8x32xf32, #tpu.memory_space<vmem>>, vector<1x1x8x32xf32>,
    } else {
    }
    %c0 = arith.constant 0 : index
    %c0_1 = arith.constant 0 : index
    %c0_2 = arith.constant 0 : index
    %3 = vector.load %arg3[%c0, %c0_1, %c0_2] : memref<1x128x96xbf16, #tpu.memory_space<vmem>>, vector<1x128x96xbf16>
    %4 = vector.shape_cast %3 : vector<1x128x96xbf16> to vector<128x96xbf16>
    %c0_3 = arith.constant 0 : index
    %c0_4 = arith.constant 0 : index
    %5 = vector.load %arg4[%c0_3, %c0_4] : memref<96x32xbf16, #tpu.memory_space<vmem>>, vector<96x32xbf16>
    %cst = arith.constant dense<0.000000e+00> : vector<128x32xf32>
    %6 = tpu.matmul %4, %5, %cst {dimension_numbers = #tpu.dot_dimension_numbers<[1], [0], [0], [1], [0, 0, 1, 1], [], []>} : vector<128x96xbf16>, vector<96x32xbf16>, vector<128x32xf32> -> vector<128x32xf32>
    %c0_5 = arith.constant 0 : index
    %c0_6 = arith.constant 0 : index
    %7 = vector.load %arg5[%c0_5, %c0_6] : memref<8x32xf32, #tpu.memory_space<vmem>>, vector<1x32xf32>
    %8 = vector.broadcast %7 : vector<1x32xf32> to vector<128x32xf32>
    %9 = arith.addf %6, %8 : vector<128x32xf32>
    %cst_7 = arith.constant dense<0.000000e+00> : vector<128xf32>
    %10 = vector.multi_reduction <add>, %9, %cst_7 [1] : vector<128x32xf32> to vector<128xf32>
    %11 = vector.shape_cast %10 : vector<128xf32> to vector<128x1xf32>
    %cst_8 = arith.constant 3.200000e+01 : f32
    %12 = vector.broadcast %cst_8 : f32 to vector<128x1xf32>
    %13 = arith.divf %11, %12 : vector<128x1xf32>
    %14 = vector.broadcast %13 : vector<128x1xf32> to vector<128x32xf32>
    %15 = arith.subf %9, %14 : vector<128x32xf32>
    %16 = arith.mulf %15, %15 : vector<128x32xf32>
    %cst_9 = arith.constant dense<0.000000e+00> : vector<128xf32>
    %17 = vector.multi_reduction <add>, %16, %cst_9 [1] : vector<128x32xf32> to vector<128xf32>
    %18 = vector.shape_cast %17 : vector<128xf32> to vector<128x1xf32>
    %cst_10 = arith.constant 3.200000e+01 : f32
    %19 = vector.broadcast %cst_10 : f32 to vector<128x1xf32>
    %20 = arith.divf %18, %19 : vector<128x1xf32>
    %cst_11 = arith.constant 9.99999974E-6 : f32
    %21 = vector.broadcast %cst_11 : f32 to vector<128x1xf32>
    %22 = arith.addf %20, %21 : vector<128x1xf32>
    %23 = math.rsqrt %22 : vector<128x1xf32>
    %24 = vector.broadcast %23 : vector<128x1xf32> to vector<128x32xf32>
    %25 = arith.mulf %15, %24 : vector<128x32xf32>
    %c1 = arith.constant 1 : index
    %c0_12 = arith.constant 0 : index
    %26 = vector.load %arg5[%c1, %c0_12] : memref<8x32xf32, #tpu.memory_space<vmem>>, vector<1x32xf32>
    %27 = vector.broadcast %26 : vector<1x32xf32> to vector<128x32xf32>
    %28 = arith.mulf %25, %27 : vector<128x32xf32>
    %c2 = arith.constant 2 : index
    %c0_13 = arith.constant 0 : index
    %29 = vector.load %arg5[%c2, %c0_13] : memref<8x32xf32, #tpu.memory_space<vmem>>, vector<1x32xf32>
    %30 = vector.broadcast %29 : vector<1x32xf32> to vector<128x32xf32>
    %31 = arith.addf %28, %30 : vector<128x32xf32>
    %c0_14 = arith.constant 0 : index
    %c0_15 = arith.constant 0 : index
    %c0_16 = arith.constant 0 : index
    %c0_17 = arith.constant 0 : index
    %32 = vector.load %arg6[%c0_14, %c0_15, %c0_16, %c0_17] : memref<1x1x8x32xf32, #tpu.memory_space<vmem>>, vector<1x1x8x32xf32>
    %33 = vector.shape_cast %32 : vector<1x1x8x32xf32> to vector<8x32xf32>
    %34 = vector.shape_cast %31 : vector<128x32xf32> to vector<16x8x32xf32>
    %cst_18 = arith.constant dense<0.000000e+00> : vector<8x32xf32>
    %35 = vector.multi_reduction <add>, %34, %cst_18 [0] : vector<16x8x32xf32> to vector<8x32xf32>
    %36 = arith.addf %33, %35 : vector<8x32xf32>
    %c0_19 = arith.constant 0 : index
    %c0_20 = arith.constant 0 : index
    %c0_21 = arith.constant 0 : index
    %c0_22 = arith.constant 0 : index
    %37 = vector.load %arg6[%c0_19, %c0_20, %c0_21, %c0_22] : memref<1x1x8x32xf32, #tpu.memory_space<vmem>>, vector<1x1x8x32xf32>
    %38 = vector.shape_cast %37 : vector<1x1x8x32xf32> to vector<8x32xf32>
    %39 = vector.shape_cast %36 : vector<8x32xf32> to vector<1x1x8x32xf32>
    tpu.vector_store %arg6[%c0_19, %c0_20, %c0_21, %c0_22], %39 {strides = array<i32>} : memref<1x1x8x32xf32, #tpu.memory_space<vmem>>, vector<1x1x8x32xf32>,
    return
  }
  func.func @transform_0(%arg0: i32, %arg1: i32, %arg2: i32) -> (i32, i32, i32) {
    %c1_i32 = arith.constant 1 : i32
    %0 = arith.muli %arg0, %c1_i32 : i32
    %1 = arith.addi %0, %arg2 : i32
    %c0_i32 = arith.constant 0 : i32
    %c0_i32_0 = arith.constant 0 : i32
    return %arg1, %1, %c0_i32 : i32, i32, i32
  }
  func.func @transform_1(%arg0: i32, %arg1: i32, %arg2: i32) -> (i32, i32) {
    %c0_i32 = arith.constant 0 : i32
    %c0_i32_0 = arith.constant 0 : i32
    %c0_i32_1 = arith.constant 0 : i32
    return %c0_i32, %c0_i32_0 : i32, i32
  }
  func.func @transform_2(%arg0: i32, %arg1: i32, %arg2: i32) -> (i32, i32) {
    %c0_i32 = arith.constant 0 : i32
    %c0_i32_0 = arith.constant 0 : i32
    %c0_i32_1 = arith.constant 0 : i32
    return %c0_i32, %c0_i32_0 : i32, i32
  }
  func.func @transform_3(%arg0: i32, %arg1: i32, %arg2: i32) -> (i32, i32, i32, i32) {
    %c0_i32 = arith.constant 0 : i32
    %c0_i32_0 = arith.constant 0 : i32
    %c0_i32_1 = arith.constant 0 : i32
    return %arg0, %arg1, %c0_i32, %c0_i32_0 : i32, i32, i32, i32
  }
}

module attributes {stable_mosaic.version = 11 : i64} {
  func.func @_head_kernel(%arg0: i32, %arg1: memref<2x2x8x32xf32, #tpu.memory_space<vmem>>, %arg2: memref<32x16xf32, #tpu.memory_space<vmem>>, %arg3: memref<1x16xf32, #tpu.memory_space<vmem>>, %arg4: memref<16x1xf32, #tpu.memory_space<vmem>>, %arg5: memref<1x1xf32, #tpu.memory_space<vmem>>, %arg6: memref<2x128xf32, #tpu.memory_space<vmem>>) attributes {dimension_semantics = [#tpu.dimension_semantics<arbitrary>], iteration_bounds = array<i64: 1>, scalar_prefetch = 0 : i64, scratch_operands = 0 : i64, tpu.core_type = #tpu.core_type<tc>, window_params = [{pipeline_mode = #tpu.pipeline_mode<synchronous>, transform_indices = @transform_0, window_bounds = array<i64: 2, 2, 8, 32>}, {pipeline_mode = #tpu.pipeline_mode<synchronous>, transform_indices = @transform_1, window_bounds = array<i64: 32, 16>}, {pipeline_mode = #tpu.pipeline_mode<synchronous>, transform_indices = @transform_2, window_bounds = array<i64: 1, 16>}, {pipeline_mode = #tpu.pipeline_mode<synchronous>, transform_indices = @transform_3, window_bounds = array<i64: 16, 1>}, {pipeline_mode = #tpu.pipeline_mode<synchronous>, transform_indices = @transform_4, window_bounds = array<i64: 1, 1>}, {pipeline_mode = #tpu.pipeline_mode<synchronous>, transform_indices = @transform_5, window_bounds = array<i64: 2, 128>}]} {
    %c0 = arith.constant 0 : index
    %c0_0 = arith.constant 0 : index
    %c0_1 = arith.constant 0 : index
    %c0_2 = arith.constant 0 : index
    %0 = vector.load %arg1[%c0, %c0_0, %c0_1, %c0_2] : memref<2x2x8x32xf32, #tpu.memory_space<vmem>>, vector<2x2x8x32xf32>
    %cst = arith.constant dense<0.000000e+00> : vector<2x8x32xf32>
    %1 = vector.multi_reduction <add>, %0, %cst [0] : vector<2x2x8x32xf32> to vector<2x8x32xf32>
    %cst_3 = arith.constant dense<0.000000e+00> : vector<2x32xf32>
    %2 = vector.multi_reduction <add>, %1, %cst_3 [1] : vector<2x8x32xf32> to vector<2x32xf32>
    %cst_4 = arith.constant 3.906250e-03 : f32
    %3 = vector.broadcast %cst_4 : f32 to vector<2x32xf32>
    %4 = arith.mulf %2, %3 : vector<2x32xf32>
    %c0_5 = arith.constant 0 : index
    %c0_6 = arith.constant 0 : index
    %5 = vector.load %arg2[%c0_5, %c0_6] : memref<32x16xf32, #tpu.memory_space<vmem>>, vector<32x16xf32>
    %cst_7 = arith.constant dense<0.000000e+00> : vector<2x16xf32>
    %6 = tpu.matmul %4, %5, %cst_7 {dimension_numbers = #tpu.dot_dimension_numbers<[1], [0], [0], [1], [0, 0, 1, 1], [], []>} : vector<2x32xf32>, vector<32x16xf32>, vector<2x16xf32> -> vector<2x16xf32>
    %c0_8 = arith.constant 0 : index
    %c0_9 = arith.constant 0 : index
    %7 = vector.load %arg3[%c0_8, %c0_9] : memref<1x16xf32, #tpu.memory_space<vmem>>, vector<1x16xf32>
    %8 = vector.broadcast %7 : vector<1x16xf32> to vector<2x16xf32>
    %9 = arith.addf %6, %8 : vector<2x16xf32>
    %cst_10 = arith.constant 5.000000e-01 : f32
    %10 = vector.broadcast %cst_10 : f32 to vector<2x16xf32>
    %11 = arith.mulf %10, %9 : vector<2x16xf32>
    %cst_11 = arith.constant 0.707106769 : f32
    %12 = vector.broadcast %cst_11 : f32 to vector<2x16xf32>
    %13 = arith.mulf %9, %12 : vector<2x16xf32>
    %14 = math.erf %13 : vector<2x16xf32>
    %cst_12 = arith.constant 1.000000e+00 : f32
    %15 = vector.broadcast %cst_12 : f32 to vector<2x16xf32>
    %16 = arith.addf %15, %14 : vector<2x16xf32>
    %17 = arith.mulf %11, %16 : vector<2x16xf32>
    %c0_13 = arith.constant 0 : index
    %c0_14 = arith.constant 0 : index
    %18 = vector.load %arg4[%c0_13, %c0_14] : memref<16x1xf32, #tpu.memory_space<vmem>>, vector<16x1xf32>
    %cst_15 = arith.constant dense<0.000000e+00> : vector<2x1xf32>
    %19 = tpu.matmul %17, %18, %cst_15 {dimension_numbers = #tpu.dot_dimension_numbers<[1], [0], [0], [1], [0, 0, 1, 1], [], []>} : vector<2x16xf32>, vector<16x1xf32>, vector<2x1xf32> -> vector<2x1xf32>
    %c0_16 = arith.constant 0 : index
    %c0_17 = arith.constant 0 : index
    %20 = vector.load %arg5[%c0_16, %c0_17] : memref<1x1xf32, #tpu.memory_space<vmem>>, vector<1x1xf32>
    %21 = vector.broadcast %20 : vector<1x1xf32> to vector<2x1xf32>
    %22 = arith.addf %19, %21 : vector<2x1xf32>
    %23 = vector.shape_cast %22 : vector<2x1xf32> to vector<2x1xf32>
    %24 = vector.broadcast %23 : vector<2x1xf32> to vector<2x128xf32>
    %c0_18 = arith.constant 0 : index
    %c0_19 = arith.constant 0 : index
    %25 = vector.load %arg6[%c0_18, %c0_19] : memref<2x128xf32, #tpu.memory_space<vmem>>, vector<2x128xf32>
    tpu.vector_store %arg6[%c0_18, %c0_19], %24 {strides = array<i32>} : memref<2x128xf32, #tpu.memory_space<vmem>>, vector<2x128xf32>,
    return
  }
  func.func @transform_0(%arg0: i32) -> (i32, i32, i32, i32) {
    %c0_i32 = arith.constant 0 : i32
    %c0_i32_0 = arith.constant 0 : i32
    %c0_i32_1 = arith.constant 0 : i32
    %c0_i32_2 = arith.constant 0 : i32
    %c0_i32_3 = arith.constant 0 : i32
    return %c0_i32, %c0_i32_0, %c0_i32_1, %c0_i32_2 : i32, i32, i32, i32
  }
  func.func @transform_1(%arg0: i32) -> (i32, i32) {
    %c0_i32 = arith.constant 0 : i32
    %c0_i32_0 = arith.constant 0 : i32
    %c0_i32_1 = arith.constant 0 : i32
    return %c0_i32, %c0_i32_0 : i32, i32
  }
  func.func @transform_2(%arg0: i32) -> (i32, i32) {
    %c0_i32 = arith.constant 0 : i32
    %c0_i32_0 = arith.constant 0 : i32
    %c0_i32_1 = arith.constant 0 : i32
    return %c0_i32, %c0_i32_0 : i32, i32
  }
  func.func @transform_3(%arg0: i32) -> (i32, i32) {
    %c0_i32 = arith.constant 0 : i32
    %c0_i32_0 = arith.constant 0 : i32
    %c0_i32_1 = arith.constant 0 : i32
    return %c0_i32, %c0_i32_0 : i32, i32
  }
  func.func @transform_4(%arg0: i32) -> (i32, i32) {
    %c0_i32 = arith.constant 0 : i32
    %c0_i32_0 = arith.constant 0 : i32
    %c0_i32_1 = arith.constant 0 : i32
    return %c0_i32, %c0_i32_0 : i32, i32
  }
  func.func @transform_5(%arg0: i32) -> (i32, i32) {
    %c0_i32 = arith.constant 0 : i32
    %c0_i32_0 = arith.constant 0 : i32
    %c0_i32_1 = arith.constant 0 : i32
    return %c0_i32, %c0_i32_0 : i32, i32
  }
}

</mosaic_0001>

<bundles_post_ra>
// kernel: base_evaluator.3
= control target key start
LH: loop header
LB: loop body
LE: loop exit
PB: predicated region body
PF: predicated region fallthrough
CT: control target
= control target key end

     0   :  { %vm26_vm0 = vcmask 261120   ;;  %vm59_vm1 = vcmask 1041409   ;;  %vm133_vm6 = vcmask 130048   ;;  %s253_s1 = inlined_call_operand.vmem [shape: f32[32,16], index: 1, kind: input, shape index: {}]   ;;  %s254_s0 = inlined_call_operand.vmem [shape: f32[2,2,8,32], index: 0, kind: input, shape index: {}]   ;;  %s255_s2 = inlined_call_operand.vmem [shape: f32[1,16], index: 2, kind: input, shape index: {}]   ;;  %s256_s3 = inlined_call_operand.vmem [shape: f32[16,1], index: 3, kind: input, shape index: {}]   ;;  %s257_s4 = inlined_call_operand.<no memory space> [shape: f32[1,1], index: 4, kind: input, shape index: {}]   ;;  %s258_s5 = inlined_call_operand.vmem [shape: f32[2,128], index: 5, kind: output, shape index: {}]  }
   0x1   :  { %v52_v0 = vld [vmem:[%s253_s1 + $0x18] sm:$0xff]  ;;  %v51_v1 = vld [vmem:[%s253_s1 + $0x10] sm:$0xff]  ;;  %v50_v2 = vld [vmem:[%s253_s1 + $0x8] sm:$0xff]  ;;  %v10_v51 = vstv %s257_s4 }
   0x2   :  { %75 = vmatpush.msra.mxu0 %v52_v0  ;;  %v22_v3 = vld [vmem:[%s254_s0] sm:$0xff]  ;;  %v23_v4 = vld [vmem:[%s254_s0 + $0x8] sm:$0xff]  ;;  %v24_v5 = vld [vmem:[%s254_s0 + $0x10] sm:$0xff]  ;;  %11 = vst [vmem:[#allocation2] sm:$0x1] %v10_v51 }
   0x3   :  { %v25_v6 = vld [vmem:[%s254_s0 + $0x18] sm:$0xff]  ;;  %v27_v7 = vsel %vm26_vm0, %v22_v3, 0.0  ;;  %v30_v8 = vsel %vm26_vm0, %v23_v4, 0.0  ;;  %v28_v9 = vsel %vm26_vm0, %v24_v5, 0.0  ;;  %v49_v11 = vld [vmem:[%s253_s1] sm:$0xff]  ;;  %v128_v43 = vld [vmem:[%s256_s3 + $0x8] sm:$0xff] }
   0x4   :  { %76 = vmatpush.msra.mxu0 %v51_v1  ;;  %v31_v10 = vsel %vm26_vm0, %v25_v6, 0.0  ;;  %v29_v12 = vadd.f32 %v28_v9, %v27_v7  ;;  %v172_v31 = vld [vmem:[%s255_s2] ss:$0 sm:$0xff]  ;;  %151 = vmatpush.msra.mxu1 %v128_v43 }
   0x5   :  { %v32_v13 = vadd.f32 %v31_v10, %v30_v8  ;;  %v127_v44 = vld [vmem:[%s256_s3] sm:$0xff] }
   0x6   :  { %77 = vmatpush.msra.mxu0 %v50_v2  ;;  %v33_v14 = vsel %vm26_vm0, %v29_v12, 0.0  ;;  %152 = vmatpush.msra.mxu1 %v127_v44  ;;  %v176_v12 = vmov 0  }
   0x7   :  { %v40_v15 = vsel %vm26_vm0, %v32_v13, 0.0  ;;  %v34_v16 = vrot.slane %v33_v14, 4  ;;  %171 = vset.pattern.permute.xlu0 %v176_v12 }
   0x8   :  { %78 = vmatpush.msra.mxu0 %v49_v11  ;;  %v41_v17 = vrot.slane %v40_v15, 4 }
   0x9   :  { %v35_v18 = vadd.f32 %v34_v16, %v33_v14  ;;  %v173_v13 = vld [vmem:[#allocation2] ss:$0 sm:$0xff] }
   0xa   :  { %v42_v19 = vadd.f32 %v41_v17, %v40_v15 }
   0xb   :  { %v36_v20 = vrot.slane %v35_v18, 2 }
   0xc   :  { %v43_v21 = vrot.slane %v42_v19, 2 }
   0xd   :  { %v37_v22 = vadd.f32 %v36_v20, %v35_v18 }
   0xe   :  { %v44_v23 = vadd.f32 %v43_v21, %v42_v19 }
   0xf   :  { %v38_v24 = vrot.slane %v37_v22, 1 }
  0x10   :  { %v45_v25 = vrot.slane %v44_v23, 1 }
  0x11   :  { %v39_v26 = vadd.f32 %v38_v24, %v37_v22 }
  0x12   :  { %v46_v27 = vadd.f32 %v45_v25, %v44_v23 }
  0x13   :  { %v47_v28 = vmul.f32 0.00390625, %v39_v26 }
  0x14   :  { %v48_v29 = vmul.f32 0.00390625, %v46_v27 }
  0x16   :  { %v60_v30 = vsel %vm59_vm1, %v48_v29, %v47_v28 }
  0x17   :  { %167 = vmatmul.msk.f32.vlgmr.msra.gmra.mxu0 %vm26_vm0, %v60_v30 }
  0x94   :  { %v80_v32 = vpop.f32.mrf.mxu0 }
  0x95   :  { %v81_v33 = vadd.f32 %v172_v31, %v80_v32 }
  0x97   :  { %v84_v34 = vmul.f32 0.70710677, %v81_v33  ;;  %v83_v9 = vmul.f32 0.5, %v81_v33 }
  0x99   :  { %v85_v35 = vmul.f32 %v84_v34, %v84_v34 }
  0x9b   :  { %v86_v36 = vmin.f32 %v85_v35, 16.0 }
  0x9d   :  { %v87_v37 = vmul.f32 2.1237322e-06, %v86_v36  ;;  %v98_v38 = vmul.f32 3.8918573e-05, %v86_v36 }
  0x9f   :  { %v88_v39 = vadd.f32 0.00028619796, %v87_v37  ;;  %v99_v40 = vadd.f32 0.001143296, %v98_v38 }
  0xa1   :  { %v89_v41 = vmul.f32 %v88_v39, %v86_v36  ;;  %v100_v42 = vmul.f32 %v99_v40, %v86_v36 }
  0xa3   :  { %v101_v45 = vadd.f32 0.014752088, %v100_v42  ;;  %v90_v46 = vadd.f32 0.0036580483, %v89_v41 }
  0xa5   :  { %v102_v47 = vmul.f32 %v101_v45, %v86_v36  ;;  %v91_v49 = vmul.f32 %v90_v46, %v86_v36 }
  0xa7   :  { %v103_v48 = vadd.f32 0.112945676, %v102_v47  ;;  %v92_v53 = vadd.f32 0.05243302, %v91_v49 }
  0xa9   :  { %v104_v50 = vmul.f32 %v103_v48, %v86_v36  ;;  %v93_v56 = vmul.f32 %v92_v53, %v86_v36 }
  0xab   :  { %v105_v52 = vadd.f32 0.4994258, %v104_v50  ;;  %v94_v57 = vadd.f32 0.18741608, %v93_v56 }
  0xad   :  { %v106_v54 = vmul.f32 %v105_v52, %v86_v36  ;;  %v95_v59 = vmul.f32 %v94_v57, %v86_v36 }
  0xaf   :  { %v107_v55 = vadd.f32 1.0, %v106_v54  ;;  %v96_v63 = vadd.f32 1.1283791, %v95_v59 }
  0xb1   :  { %174 = vrcp.f32 %v107_v55  ;;  %v119_v62 = vand.u32 2147483648, %v107_v55  ;;  %v117_v1 = vand.u32 2147483647, %v107_v55  ;;  %vm113_vm3 = vweird.f32 %v107_v55 }
  0xb2   :  { %v97_v4 = vmul.f32 %v96_v63, %v84_v34 }
  0xb3   :  { %v120_v3 = vor.u32 1.1754944e-38, %v119_v62  ;;  %vm118_vm5 = vcmp.eq.f32.partialorder %v117_v1, 8.507059e+37 }
  0xb7   :  { %v175_v58 = vpop.eup %174 }
  0xb8   :  { %v109_v60 = vmul.f32 %v175_v58, %v107_v55  ;;  %vm114_vm2 = vweird.f32 %v175_v58 }
  0xb9   :  { %vm115_vm4 = vmor %vm113_vm3, %vm114_vm2 }
  0xba   :  { %v110_v61 = vsub.f32 1.0, %v109_v60 }
  0xbc   :  { %v111_v0 = vmul.f32 %v175_v58, %v110_v61 }
  0xbe   :  { %v112_v2 = vadd.f32 %v175_v58, %v111_v0 }
  0xc0   :  { %v116_v5 = vsel %vm115_vm4, %v175_v58, %v112_v2 }
  0xc1   :  { %v121_v6 = vsel %vm118_vm5, %v120_v3, %v116_v5 }
  0xc2   :  { %v122_v7 = vmul.f32 %v121_v6, %v97_v4 }
  0xc4   :  { %v168_v8 = vclamps-f32 %v122_v7, 1.0 }
  0xc6   :  { %v125_v10 = vadd.f32 1.0, %v168_v8 }
  0xc8   :  { %v126_v11 = vmul.f32 %v125_v10, %v83_v9 }
  0xca   :  { %169 = vmatmul.msk.f32.vlgmr.msra.gmra.mxu1 %vm133_vm6, %v126_v11 }
 0x147   :  { %v154_v14 = vpop.f32.mrf.mxu1 }
 0x148   :  { %v155_v15 = vadd.f32 %v173_v13, %v154_v14 }
 0x14a   :  { %159 = vperm.xlu0 %171, %v155_v15  }
 0x1bc   :  { %v160_v16 = vpop.permute.xlu0 %159 }
 0x1bd   :  { %162 = vst [vmem:[%s258_s5] sm:$0x3] %v160_v16 }

// kernel: base_evaluator.2
= control target key start
LH: loop header
LB: loop body
LE: loop exit
PB: predicated region body
PF: predicated region fallthrough
CT: control target
= control target key end

     0   :  { %s1176_s12 = smov 0   ;;  %s1178_s13 = smov 0   ;;  %s1734_s0 = inlined_call_operand.vmem [shape: bf16[2,256,96], index: 0, kind: input, shape index: {}]   ;;  %s1735_s1 = inlined_call_operand.vmem [shape: bf16[96,32], index: 1, kind: input, shape index: {}]   ;;  %s1736_s2 = inlined_call_operand.vmem [shape: f32[8,32], index: 2, kind: input, shape index: {}]   ;;  %s1737_s3 = inlined_call_operand.vmem [shape: f32[2,2,8,32], index: 3, kind: output, shape index: {}]  }
   0x1   :  { %s1180_s14 = smov 0   ;;  %s1182_s15 = smov 0  }
   0x2   :  { %s1184_s16 = smov 0  }
   0x3 LB: > { %s28_s17 = sadd.s32 1, %s1144_s14  ;;  %s32_s18 = sadd.s32 1, %s1148_s15  ;;  %s1152_s16 = sphi %s1184_s16, %s13_s16   ;;  %s1148_s15 = sphi %s1182_s15, %s1755_s15   ;;  %s1144_s14 = sphi %s1180_s14, %s1754_s14   ;;  %s1140_s13 = sphi %s1178_s13, %s1753_s13   ;;  %s1136_s12 = sphi %s1176_s12, %s1752_s12  }
   0x4   : > { %p30_p0 = scmp.ge.s32.totalorder %s28_s17, 2  ;;  %p931_p1 = scmp.ge.s32.totalorder %s1152_s16, 1 }
   0x5   : > { %p169_p2 = scmp.lt.s32.totalorder %s1152_s16, 5 }
   0x6   : > { %s1757_s17 = smov (%p30_p0, %s28_s17), 0  ;;  %s1759_s18 = smov (!%p30_p0, %s32_s18), %s1148_s15 }
   0x7   : > { %p170_p3 = pnand %p931_p1, %p169_p2  ;;  %p34_p4 = scmp.ge.s32.totalorder %s1759_s18, 2 }
   0x8   : > { %s932_s21 = sshll.u32 (!%p170_p3), %s1140_s13, 4  ;;  %p203_p5 = scmp.lt.s32.totalorder (!%p170_p3), %s1136_s12, 1 }
   0x9   : > { %s1761_s18 = smov (%p34_p4, %s1759_s18), 0  ;;  %173 = sbr.rel (%p170_p3) target bundleno = 501 (0x1f5), region = 32 }
   0xa   : > { %p205_p6 = scmp.lt.s32.totalorder (!%p170_p3), %s932_s21, 31  ;;  %p213_p7 = scmp.lt.s32.totalorder (!%p170_p3), %s1140_s13, 1 }
   0xe   : > { %v1016_v0 = vld [vmem:[%s1735_s1 + $0x28] sm:$0xff]  ;;  %v1015_v1 = vld [vmem:[%s1735_s1 + $0x20] sm:$0xff]  ;;  %s1763_s12 = smov (!%p203_p5, %s1136_s12), 1  ;;  %v1014_v2 = vld [vmem:[%s1735_s1 + $0x18] sm:$0xff]  ;;  %s1765_s21 = smov (!%p205_p6, %s932_s21), 31  ;;  %vm334_vm0 = vcmask 785408  }
   0xf   : > { %361 = vmatpush.bf16.msra.mxu0 %v1016_v0  ;;  %1017 = vmatpush.bf16.msra.mxu1 %v1016_v0  ;;  %s933_s26 = sshll.u32 %s1763_s12, 5  ;;  %v1013_v3 = vld [vmem:[%s1735_s1 + $0x10] sm:$0xff]  ;;  %v1012_v4 = vld [vmem:[%s1735_s1 + $0x8] sm:$0xff]  ;;  %v1011_v5 = vld [vmem:[%s1735_s1] sm:$0xff]  ;;  %vm226_vm1 = vcmask 261120   ;;  %v1154_v63 = vmov 32.0  }
  0x10   : > { %1018 = vmatpush.bf16.msra.mxu2 %v1016_v0  ;;  %1019 = vmatpush.bf16.msra.mxu3 %v1016_v0  ;;  %s208_s29 = sadd.s32 %s933_s26, %s1765_s21  ;;  %v1244_v14 = vld [vmem:[%s1736_s2] ss:$0 sm:$0xff]  ;;  %1080 = vrcp.f32 %v1154_v63  ;;  %s1767_s13 = smov (!%p213_p7, %s1140_s13), 1 }
  0x11   : > { %s934_s5 = sshll.u32 %s208_s29, 2  ;;  %s935_s24 = sshll.u32 %s1767_s13, 1 }
  0x12   : > { %s210_s10 = scalar_lea.vmem %s1734_s0, %s934_s5  ;;  %s1626_s13 = sadd.s32 %s935_s24, %s1763_s12 }
  0x13   : > { %362 = vmatpush.bf16.msra.mxu0 %v1015_v1  ;;  %1020 = vmatpush.bf16.msra.mxu1 %v1015_v1  ;;  %v1003_v6 = vld [vmem:[%s210_s10] sm:$0xff]  ;;  %v1005_v7 = vld [vmem:[%s210_s10 + $0x10] sm:$0xff]  ;;  %v1004_v10 = vld [vmem:[%s210_s10 + $0x8] sm:$0xff]  ;;  %s936_s12 = sshll.u32 %s1626_s13, 3 }
  0x14   : > { %1021 = vmatpush.bf16.msra.mxu2 %v1015_v1  ;;  %1022 = vmatpush.bf16.msra.mxu3 %v1015_v1  ;;  %v1007_v8 = vld [vmem:[%s210_s10 + $0x20] sm:$0xff]  ;;  %v1009_v9 = vld [vmem:[%s210_s10 + $0x30] sm:$0xff]  ;;  %v1006_v11 = vld [vmem:[%s210_s10 + $0x18] sm:$0xff]  ;;  %s1659_s27 = scalar_lea.vmem %s1737_s3, %s936_s12 }
  0x15   : > { %v1008_v12 = vld [vmem:[%s210_s10 + $0x28] sm:$0xff]  ;;  %v1010_v13 = vld [vmem:[%s210_s10 + $0x38] sm:$0xff] }
  0x16   : > { %v1081_v0 = vpop.eup %1080 }
  0x17   : > { %363 = vmatpush.bf16.msra.mxu0 %v1014_v2  ;;  %1023 = vmatpush.bf16.msra.mxu1 %v1014_v2  ;;  %v458_v1 = vmul.f32 32.0, %v1081_v0  ;;  %vm462_vm2 = vweird.f32 %v1081_v0 }
  0x18   : > { %1024 = vmatpush.bf16.msra.mxu2 %v1014_v2  ;;  %1025 = vmatpush.bf16.msra.mxu3 %v1014_v2 }
  0x19   : > { %v459_v2 = vsub.f32 1.0, %v458_v1 }
  0x1b   : > { %364 = vmatpush.bf16.msra.mxu0 %v1013_v3  ;;  %1026 = vmatpush.bf16.msra.mxu1 %v1013_v3 }
  0x1c   : > { %1027 = vmatpush.bf16.msra.mxu2 %v1013_v3  ;;  %1028 = vmatpush.bf16.msra.mxu3 %v1013_v3  ;;  %v460_v3 = vmul.f32 %v1081_v0, %v459_v2 }
  0x1f   : > { %365 = vmatpush.bf16.msra.mxu0 %v1012_v4  ;;  %1029 = vmatpush.bf16.msra.mxu1 %v1012_v4 }
  0x20   : > { %1030 = vmatpush.bf16.msra.mxu2 %v1012_v4  ;;  %1031 = vmatpush.bf16.msra.mxu3 %v1012_v4  ;;  %v461_v4 = vadd.f32 %v1081_v0, %v460_v3 }
  0x23   : > { %366 = vmatpush.bf16.msra.mxu0 %v1011_v5  ;;  %1032 = vmatpush.bf16.msra.mxu1 %v1011_v5 }
  0x24   : > { %1033 = vmatpush.bf16.msra.mxu2 %v1011_v5  ;;  %1034 = vmatpush.bf16.msra.mxu3 %v1011_v5  ;;  %v1326_v5 = vsel %vm462_vm2, %v1081_v0, %v461_v4 }
  0x26   : > { %993 = vmatmul.msk.bf16.vlgmr.msra.gmra.mxu0 %vm334_vm0, %v1003_v6  ;;  %995 = vmatmul.msk.bf16.vlgmr.msra.gmra.mxu1 %vm334_vm0, %v1005_v7 }
  0x27   : > { %997 = vmatmul.msk.bf16.vlgmr.msra.gmra.mxu2 %vm334_vm0, %v1007_v8  ;;  %999 = vmatmul.msk.bf16.vlgmr.msra.gmra.mxu3 %vm334_vm0, %v1009_v9 }
  0x36   : > { %994 = vmatmul.msk.bf16.gmra.mxu0 %vm334_vm0, %v1004_v10  ;;  %996 = vmatmul.msk.bf16.gmra.mxu1 %vm334_vm0, %v1006_v11 }
  0x37   : > { %998 = vmatmul.msk.bf16.gmra.mxu2 %vm334_vm0, %v1008_v12  ;;  %1000 = vmatmul.msk.bf16.gmra.mxu3 %vm334_vm0, %v1010_v13 }
  0xa3   : > { %v368_v15 = vpop.f32.mrf.mxu0  ;;  %v378_v16 = vpop.f32.mrf.mxu1 }
  0xa4   : > { %v1247_v17 = vadd.f32 %v1244_v14, %v368_v15  ;;  %v1250_v18 = vadd.f32 %v1244_v14, %v378_v16 }
  0xa6   : > { %v421_v19 = vsel %vm226_vm1, %v1250_v18, 0.0  ;;  %v409_v20 = vsel %vm226_vm1, %v1247_v17, 0.0 }
  0xa7   : > { %422 = vadd.xlane.f32.xlu2 %v421_v19  ;;  %410 = vadd.xlane.f32.xlu0 %v409_v20 }
  0xaa   : > { %v388_v21 = vpop.f32.mrf.mxu2  ;;  %v398_v22 = vpop.f32.mrf.mxu3 }
  0xab   : > { %v370_v23 = vpop.f32.mrf.mxu0  ;;  %v380_v24 = vpop.f32.mrf.mxu1  ;;  %v1267_v29 = vadd.f32 %v1244_v14, %v388_v21  ;;  %v1295_v49 = vadd.f32 %v1244_v14, %v398_v22 }
  0xac   : > { %v1257_v25 = vadd.f32 %v1244_v14, %v370_v23  ;;  %v1260_v26 = vadd.f32 %v1244_v14, %v380_v24 }
  0xad   : > { %v433_v36 = vsel %vm226_vm1, %v1267_v29, 0.0  ;;  %v445_v55 = vsel %vm226_vm1, %v1295_v49, 0.0 }
  0xae   : > { %v424_v27 = vsel %vm226_vm1, %v1260_v26, 0.0  ;;  %v412_v28 = vsel %vm226_vm1, %v1257_v25, 0.0 }
  0xaf   : > { %425 = vadd.xlane.f32.xlu2 %v424_v27  ;;  %413 = vadd.xlane.f32.xlu0 %v412_v28 }
  0xb2   : > { %v390_v30 = vpop.f32.mrf.mxu2  ;;  %v400_v31 = vpop.f32.mrf.mxu3 }
  0xb3   : > { %v373_v32 = vpop.f32.mrf.mxu0  ;;  %v383_v33 = vpop.f32.mrf.mxu1  ;;  %v1282_v40 = vadd.f32 %v1244_v14, %v390_v30  ;;  %v1322_v61 = vadd.f32 %v1244_v14, %v400_v31 }
  0xb4   : > { %v1270_v34 = vadd.f32 %v1244_v14, %v373_v32  ;;  %v1273_v35 = vadd.f32 %v1244_v14, %v383_v33 }
  0xb5   : > { %v436_v46 = vsel %vm226_vm1, %v1282_v40, 0.0  ;;  %v448_v62 = vsel %vm226_vm1, %v1322_v61, 0.0 }
  0xb6   : > { %v415_v37 = vsel %vm226_vm1, %v1270_v34, 0.0  ;;  %v427_v38 = vsel %vm226_vm1, %v1273_v35, 0.0 }
  0xb7   : > { %434 = vadd.xlane.f32.xlu2 %v433_v36  ;;  %416 = vadd.xlane.f32.xlu1 %v415_v37 }
  0xb8   : > { %428 = vadd.xlane.f32.xlu0 %v427_v38 }
  0xba   : > { %v393_v39 = vpop.f32.mrf.mxu2  ;;  %v403_v43 = vpop.f32.mrf.mxu3 }
  0xbb   : > { %v375_v41 = vpop.f32.mrf.mxu0  ;;  %v385_v45 = vpop.f32.mrf.mxu1  ;;  %v1305_v54 = vadd.f32 %v1244_v14, %v403_v43  ;;  %v1313_v57 = vadd.f32 %v1244_v14, %v393_v39 }
  0xbc   : > { %v1285_v42 = vadd.f32 %v1244_v14, %v375_v41  ;;  %v1292_v47 = vadd.f32 %v1244_v14, %v385_v45 }
  0xbd   : > { %v451_v58 = vsel %vm226_vm1, %v1305_v54, 0.0  ;;  %v439_v60 = vsel %vm226_vm1, %v1313_v57, 0.0 }
  0xbe   : > { %v418_v44 = vsel %vm226_vm1, %v1285_v42, 0.0  ;;  %v430_v52 = vsel %vm226_vm1, %v1292_v47, 0.0 }
  0xbf   : > { %419 = vadd.xlane.f32.xlu1 %v418_v44 }
  0xc0   : > { %437 = vadd.xlane.f32.xlu0 %v436_v46 }
  0xc2   : > { %v395_v48 = vpop.f32.mrf.mxu2  ;;  %v405_v53 = vpop.f32.mrf.mxu3 }
  0xc3   : > { %v1298_v50 = vadd.f32 %v1244_v14, %v395_v48  ;;  %v1310_v56 = vadd.f32 %v1244_v14, %v405_v53 }
  0xc5   : > { %v442_v51 = vsel %vm226_vm1, %v1298_v50, 0.0  ;;  %v454_v59 = vsel %vm226_vm1, %v1310_v56, 0.0 }
  0xc6   : > { %443 = vadd.xlane.f32.xlu2 %v442_v51 }
  0xc7   : > { %431 = vadd.xlane.f32.xlu1 %v430_v52 }
  0xc8   : > { %446 = vadd.xlane.f32.xlu0 %v445_v55 }
  0xce   : > { %452 = vadd.xlane.f32.xlu2 %v451_v58 }
  0xcf   : > { %440 = vadd.xlane.f32.xlu1 %v439_v60 }
  0xd0   : > { %455 = vadd.xlane.f32.xlu0 %v454_v59 }
  0xd7   : > { %449 = vadd.xlane.f32.xlu1 %v448_v62 }
 0x11a   : > { %v423_v6 = vpop.xlane.xlu2 %422  ;;  %v411_v7 = vpop.xlane.xlu0 %410 }
 0x11b   : > { %v468_v8 = vmul.f32 %v1326_v5, %v423_v6  ;;  %v464_v9 = vmul.f32 %v1326_v5, %v411_v7 }
 0x11d   : > { %v1331_v10 = vsub.f32 %v1250_v18, %v468_v8  ;;  %v1334_v11 = vsub.f32 %v1247_v17, %v464_v9 }
 0x11f   : > { %v500_v12 = vmul.f32 %v1331_v10, %v1331_v10  ;;  %v496_v13 = vmul.f32 %v1334_v11, %v1334_v11 }
 0x121   : > { %v524_v14 = vsel %vm226_vm1, %v500_v12, 0.0  ;;  %v512_v15 = vsel %vm226_vm1, %v496_v13, 0.0 }
 0x122   : > { %525 = vadd.xlane.f32.xlu2 %v524_v14  ;;  %v426_v16 = vpop.xlane.xlu2 %425  ;;  %513 = vadd.xlane.f32.xlu1 %v512_v15  ;;  %v414_v19 = vpop.xlane.xlu0 %413 }
 0x123   : > { %v469_v18 = vmul.f32 %v1326_v5, %v426_v16  ;;  %v465_v20 = vmul.f32 %v1326_v5, %v414_v19 }
 0x125   : > { %v1345_v17 = vsub.f32 %v1260_v26, %v469_v18  ;;  %v1348_v21 = vsub.f32 %v1257_v25, %v465_v20 }
 0x127   : > { %v501_v22 = vmul.f32 %v1345_v17, %v1345_v17  ;;  %v497_v23 = vmul.f32 %v1348_v21, %v1348_v21 }
 0x129   : > { %v527_v24 = vsel %vm226_vm1, %v501_v22, 0.0  ;;  %v515_v27 = vsel %vm226_vm1, %v497_v23, 0.0 }
 0x12a   : > { %v435_v28 = vpop.xlane.xlu2 %434  ;;  %v417_v30 = vpop.xlane.xlu1 %416  ;;  %528 = vadd.xlane.f32.xlu0 %v527_v24  ;;  %516 = vadd.xlane.f32.xlu2 %v515_v27 }
 0x12b   : > { %v466_v26 = vmul.f32 %v1326_v5, %v417_v30  ;;  %v429_v31 = vpop.xlane.xlu0 %428  ;;  %v472_v32 = vmul.f32 %v1326_v5, %v435_v28 }
 0x12c   : > { %v470_v25 = vmul.f32 %v1326_v5, %v429_v31 }
 0x12d   : > { %v1360_v33 = vsub.f32 %v1270_v34, %v466_v26  ;;  %v1370_v39 = vsub.f32 %v1267_v29, %v472_v32 }
 0x12e   : > { %v1363_v36 = vsub.f32 %v1273_v35, %v470_v25 }
 0x12f   : > { %v498_v37 = vmul.f32 %v1360_v33, %v1360_v33  ;;  %v504_v46 = vmul.f32 %v1370_v39, %v1370_v39 }
 0x130   : > { %v502_v38 = vmul.f32 %v1363_v36, %v1363_v36 }
 0x131   : > { %v518_v41 = vsel %vm226_vm1, %v498_v37, 0.0  ;;  %v536_v52 = vsel %vm226_vm1, %v504_v46, 0.0 }
 0x132   : > { %v420_v43 = vpop.xlane.xlu1 %419  ;;  %519 = vadd.xlane.f32.xlu0 %v518_v41  ;;  %v530_v44 = vsel %vm226_vm1, %v502_v38, 0.0 }
 0x133   : > { %v467_v34 = vmul.f32 %v1326_v5, %v420_v43  ;;  %531 = vadd.xlane.f32.xlu1 %v530_v44  ;;  %v438_v35 = vpop.xlane.xlu0 %437 }
 0x134   : > { %v473_v48 = vmul.f32 %v1326_v5, %v438_v35 }
 0x135   : > { %v1376_v45 = vsub.f32 %v1285_v42, %v467_v34 }
 0x136   : > { %v1386_v55 = vsub.f32 %v1282_v40, %v473_v48 }
 0x137   : > { %v499_v29 = vmul.f32 %v1376_v45, %v1376_v45 }
 0x138   : > { %v505_v1 = vmul.f32 %v1386_v55, %v1386_v55 }
 0x139   : > { %v444_v51 = vpop.xlane.xlu2 %443  ;;  %v521_v53 = vsel %vm226_vm1, %v499_v29, 0.0 }
 0x13a   : > { %v475_v58 = vmul.f32 %v1326_v5, %v444_v51  ;;  %v432_v42 = vpop.xlane.xlu1 %431  ;;  %537 = vadd.xlane.f32.xlu0 %v536_v52  ;;  %v539_v8 = vsel %vm226_vm1, %v505_v1, 0.0 }
 0x13b   : > { %v471_v59 = vmul.f32 %v1326_v5, %v432_v42  ;;  %522 = vadd.xlane.f32.xlu1 %v521_v53  ;;  %v447_v60 = vpop.xlane.xlu0 %446 }
 0x13c   : > { %v1391_v62 = vsub.f32 %v1298_v50, %v475_v58  ;;  %v476_v0 = vmul.f32 %v1326_v5, %v447_v60 }
 0x13d   : > { %v1394_v63 = vsub.f32 %v1292_v47, %v471_v59 }
 0x13e   : > { %v507_v40 = vmul.f32 %v1391_v62, %v1391_v62  ;;  %v1406_v6 = vsub.f32 %v1295_v49, %v476_v0 }
 0x13f   : > { %v503_v2 = vmul.f32 %v1394_v63, %v1394_v63 }
 0x140   : > { %v545_v4 = vsel %vm226_vm1, %v507_v40, 0.0  ;;  %v508_v16 = vmul.f32 %v1406_v6, %v1406_v6 }
 0x141   : > { %v453_v3 = vpop.xlane.xlu2 %452  ;;  %v533_v50 = vsel %vm226_vm1, %v503_v2, 0.0 }
 0x142   : > { %v478_v47 = vmul.f32 %v1326_v5, %v453_v3  ;;  %v441_v7 = vpop.xlane.xlu1 %440  ;;  %546 = vadd.xlane.f32.xlu0 %v545_v4  ;;  %534 = vadd.xlane.f32.xlu2 %v533_v50  ;;  %v548_v22 = vsel %vm226_vm1, %v508_v16, 0.0 }
 0x143   : > { %v474_v9 = vmul.f32 %v1326_v5, %v441_v7  ;;  %540 = vadd.xlane.f32.xlu1 %v539_v8  ;;  %v456_v12 = vpop.xlane.xlu0 %455 }
 0x144   : > { %v1412_v13 = vsub.f32 %v1305_v54, %v478_v47  ;;  %v479_v49 = vmul.f32 %v1326_v5, %v456_v12 }
 0x145   : > { %v1415_v14 = vsub.f32 %v1313_v57, %v474_v9 }
 0x146   : > { %v510_v15 = vmul.f32 %v1412_v13, %v1412_v13  ;;  %v1427_v54 = vsub.f32 %v1310_v56, %v479_v49 }
 0x147   : > { %v506_v19 = vmul.f32 %v1415_v14, %v1415_v14 }
 0x148   : > { %v554_v18 = vsel %vm226_vm1, %v510_v15, 0.0  ;;  %v511_v27 = vmul.f32 %v1427_v54, %v1427_v54 }
 0x149   : > { %v542_v20 = vsel %vm226_vm1, %v506_v19, 0.0 }
 0x14a   : > { %v450_v57 = vpop.xlane.xlu1 %449  ;;  %555 = vadd.xlane.f32.xlu0 %v554_v18  ;;  %543 = vadd.xlane.f32.xlu2 %v542_v20  ;;  %v557_v30 = vsel %vm226_vm1, %v511_v27, 0.0 }
 0x14b   : > { %v477_v23 = vmul.f32 %v1326_v5, %v450_v57  ;;  %549 = vadd.xlane.f32.xlu1 %v548_v22 }
 0x14d   : > { %v1432_v24 = vsub.f32 %v1322_v61, %v477_v23 }
 0x14f   : > { %v509_v28 = vmul.f32 %v1432_v24, %v1432_v24 }
 0x151   : > { %v551_v56 = vsel %vm226_vm1, %v509_v28, 0.0 }
 0x152   : > { %552 = vadd.xlane.f32.xlu2 %v551_v56 }
 0x153   : > { %558 = vadd.xlane.f32.xlu1 %v557_v30 }
 0x195   : > { %v526_v26 = vpop.xlane.xlu2 %525  ;;  %v514_v31 = vpop.xlane.xlu1 %513 }
 0x196   : > { %v564_v25 = vmul.f32 %v526_v26, %v1326_v5  ;;  %v560_v32 = vmul.f32 %v514_v31, %v1326_v5  ;;  %v1477_v31 = vld [vmem:[%s1736_s2 + $0x1] ss:$0 sm:$0xff] }
 0x198   : > { %v580_v61 = vadd.f32 1e-05, %v564_v25  ;;  %v576_v37 = vadd.f32 1e-05, %v560_v32 }
 0x19a   : > { %1082 = vrsqrt.f32 %v580_v61  ;;  %vm638_vm4 = vweird.f32 %v580_v61  ;;  %vm598_vm7 = vweird.f32 %v576_v37 }
 0x19b   : > { %1084 = vrsqrt.f32 %v576_v37 }
 0x19d   : > { %v517_v38 = vpop.xlane.xlu2 %516  ;;  %v529_v41 = vpop.xlane.xlu0 %528 }
 0x19e   : > { %v561_v43 = vmul.f32 %v517_v38, %v1326_v5  ;;  %v565_v44 = vmul.f32 %v529_v41, %v1326_v5 }
 0x1a0   : > { %v1083_v34 = vpop.eup %1082  ;;  %v577_v35 = vadd.f32 1e-05, %v561_v43  ;;  %v1444_v46 = vadd.f32 1e-05, %v565_v44 }
 0x1a1   : > { %v1085_v48 = vpop.eup %1084  ;;  %v633_v29 = vmul.f32 %v1083_v34, %v580_v61  ;;  %vm639_vm3 = vweird.f32 %v1083_v34 }
 0x1a2   : > { %v593_v51 = vmul.f32 %v1085_v48, %v576_v37  ;;  %1086 = vrsqrt.f32 %v577_v35  ;;  %vm599_vm5 = vweird.f32 %v1085_v48  ;;  %vm1459_vm6 = vmor %vm638_vm4, %vm639_vm3  ;;  %vm608_vm10 = vweird.f32 %v577_v35 }
 0x1a3   : > { %v634_v52 = vmul.f32 %v1083_v34, %v633_v29  ;;  %1088 = vrsqrt.f32 %v1444_v46  ;;  %vm1466_vm8 = vmor %vm598_vm7, %vm599_vm5  ;;  %vm648_vm13 = vweird.f32 %v1444_v46 }
 0x1a4   : > { %v594_v53 = vmul.f32 %v1085_v48, %v593_v51 }
 0x1a5   : > { %v635_v58 = vmul.f32 0.5, %v634_v52  ;;  %v520_v42 = vpop.xlane.xlu0 %519  ;;  %v1503_v52 = vld [vmem:[%s1736_s2 + $0x2] ss:$0 sm:$0xff] }
 0x1a6   : > { %v595_v59 = vmul.f32 0.5, %v594_v53  ;;  %v532_v60 = vpop.xlane.xlu1 %531  ;;  %v562_v0 = vmul.f32 %v520_v42, %v1326_v5 }
 0x1a7   : > { %v636_v40 = vsub.f32 1.5, %v635_v58  ;;  %v566_v1 = vmul.f32 %v532_v60, %v1326_v5 }
 0x1a8   : > { %v1087_v2 = vpop.eup %1086  ;;  %v596_v3 = vsub.f32 1.5, %v595_v59  ;;  %v1449_v4 = vadd.f32 1e-05, %v562_v0 }
 0x1a9   : > { %v1451_v50 = vpop.eup %1088  ;;  %v637_v47 = vmul.f32 %v1083_v34, %v636_v40  ;;  %v603_v7 = vmul.f32 %v1087_v2, %v577_v35  ;;  %v1453_v8 = vadd.f32 1e-05, %v566_v1  ;;  %vm609_vm9 = vweird.f32 %v1087_v2 }
 0x1aa   : > { %v643_v9 = vmul.f32 %v1451_v50, %v1444_v46  ;;  %1090 = vrsqrt.f32 %v1449_v4  ;;  %v597_v12 = vmul.f32 %v1085_v48, %v596_v3  ;;  %vm649_vm11 = vweird.f32 %v1451_v50  ;;  %vm610_vm12 = vmor %vm608_vm10, %vm609_vm9 }
 0x1ab   : > { %v604_v49 = vmul.f32 %v1087_v2, %v603_v7  ;;  %1092 = vrsqrt.f32 %v1453_v8  ;;  %v641_v19 = vsel %vm1459_vm6, %v1083_v34, %v637_v47  ;;  %vm1494_vm14 = vmor %vm648_vm13, %vm649_vm11  ;;  %vm618_vm0 = vweird.f32 %v1449_v4 }
 0x1ac   : > { %v644_v16 = vmul.f32 %v1451_v50, %v643_v9  ;;  %v601_v28 = vsel %vm1466_vm8, %v1085_v48, %v597_v12  ;;  %v756_v25 = vmul.f32 %v641_v19, %v1331_v10  ;;  %vm658_vm4 = vweird.f32 %v1453_v8 }
 0x1ad   : > { %v605_v18 = vmul.f32 0.5, %v604_v49  ;;  %v538_v20 = vpop.xlane.xlu0 %537  ;;  %v752_v43 = vmul.f32 %v601_v28, %v1334_v11 }
 0x1ae   : > { %v645_v22 = vmul.f32 0.5, %v644_v16  ;;  %v523_v23 = vpop.xlane.xlu1 %522  ;;  %v568_v27 = vmul.f32 %v538_v20, %v1326_v5  ;;  %v774_v35 = vmul.f32 %v1477_v31, %v756_v25 }
 0x1af   : > { %v606_v56 = vsub.f32 1.5, %v605_v18  ;;  %v563_v30 = vmul.f32 %v523_v23, %v1326_v5  ;;  %v770_v60 = vmul.f32 %v1477_v31, %v752_v43 }
 0x1b0   : > { %v1091_v26 = vpop.eup %1090  ;;  %v646_v32 = vsub.f32 1.5, %v645_v22  ;;  %v1480_v61 = vadd.f32 1e-05, %v568_v27  ;;  %v792_v9 = vadd.f32 %v1503_v52, %v774_v35 }
 0x1b1   : > { %v1482_v37 = vpop.eup %1092  ;;  %v607_v38 = vmul.f32 %v1087_v2, %v606_v56  ;;  %v613_v41 = vmul.f32 %v1091_v26, %v1449_v4  ;;  %v1491_v29 = vadd.f32 1e-05, %v563_v30  ;;  %vm619_vm15 = vweird.f32 %v1091_v26 }
 0x1b2   : > { %v647_v44 = vmul.f32 %v1451_v50, %v646_v32  ;;  %v653_v34 = vmul.f32 %v1482_v37, %v1453_v8  ;;  %1094 = vrsqrt.f32 %v1480_v61  ;;  %vm659_vm2 = vweird.f32 %v1482_v37  ;;  %vm620_vm3 = vmor %vm618_vm0, %vm619_vm15 }
 0x1b3   : > { %v611_v10 = vsel %vm610_vm12, %v1087_v2, %v607_v38  ;;  %v614_v48 = vmul.f32 %v1091_v26, %v613_v41  ;;  %1096 = vrsqrt.f32 %v1491_v29  ;;  %v788_v18 = vadd.f32 %v1503_v52, %v770_v60  ;;  %vm1536_vm5 = vmor %vm658_vm4, %vm659_vm2 }
 0x1b4   : > { %v654_v11 = vmul.f32 %v1482_v37, %v653_v34  ;;  %v753_v46 = vmul.f32 %v611_v10, %v1348_v21  ;;  %v651_v53 = vsel %vm1494_vm14, %v1451_v50, %v647_v44  ;;  %v1544_v25 = vsel %vm226_vm1, %v792_v9, 0.0 }
 0x1b5   : > { %v615_v58 = vmul.f32 0.5, %v614_v48  ;;  %v535_v42 = vpop.xlane.xlu2 %534  ;;  %v547_v59 = vpop.xlane.xlu0 %546  ;;  %v757_v47 = vmul.f32 %v651_v53, %v1345_v17  ;;  %v805_v41 = vsel %vm226_vm1, %v788_v18, 0.0  ;;  %vm628_vm6 = vweird.f32 %v1491_v29 }
 0x1b6   : > { %v655_v0 = vmul.f32 0.5, %v654_v11  ;;  %v567_v40 = vmul.f32 %v535_v42, %v1326_v5  ;;  %v541_v1 = vpop.xlane.xlu1 %540  ;;  %v571_v21 = vmul.f32 %v547_v59, %v1326_v5  ;;  %v771_v12 = vmul.f32 %v1477_v31, %v753_v46 }
 0x1b7   : > { %v616_v2 = vsub.f32 1.5, %v615_v58  ;;  %v569_v3 = vmul.f32 %v541_v1, %v1326_v5  ;;  %v775_v22 = vmul.f32 %v1477_v31, %v757_v47  ;;  %vm678_vm7 = vweird.f32 %v1480_v61 }
 0x1b8   : > { %v656_v50 = vsub.f32 1.5, %v655_v0  ;;  %v1516_v7 = vadd.f32 1e-05, %v567_v40  ;;  %v1522_v16 = vpop.eup %1094  ;;  %v1527_v17 = vadd.f32 1e-05, %v571_v21  ;;  %v789_v27 = vadd.f32 %v1503_v52, %v771_v12 }
 0x1b9   : > { %v617_v49 = vmul.f32 %v1091_v26, %v616_v2  ;;  %v1520_v15 = vadd.f32 1e-05, %v569_v3  ;;  %v1097_v4 = vpop.eup %1096  ;;  %v673_v57 = vmul.f32 %v1522_v16, %v1480_v61  ;;  %v793_v34 = vadd.f32 %v1503_v52, %v775_v22 }
 0x1ba   : > { %v657_v19 = vmul.f32 %v1482_v37, %v656_v50  ;;  %1098 = vrsqrt.f32 %v1516_v7  ;;  %v623_v23 = vmul.f32 %v1097_v4, %v1491_v29  ;;  %v806_v48 = vsel %vm226_vm1, %v789_v27, 0.0 }
 0x1bb   : > { %v621_v20 = vsel %vm620_vm3, %v1091_v26, %v617_v49  ;;  %v674_v30 = vmul.f32 %v1522_v16, %v673_v57  ;;  %1100 = vrsqrt.f32 %v1520_v15  ;;  %vm629_vm8 = vweird.f32 %v1097_v4 }
 0x1bc   : > { %v754_v56 = vmul.f32 %v621_v20, %v1360_v33  ;;  %v661_v8 = vsel %vm1536_vm5, %v1482_v37, %v657_v19  ;;  %v624_v32 = vmul.f32 %v1097_v4, %v623_v23  ;;  %1102 = vrsqrt.f32 %v1527_v17  ;;  %vm630_vm11 = vmor %vm628_vm6, %vm629_vm8 }
 0x1bd   : > { %v544_v26 = vpop.xlane.xlu2 %543  ;;  %v675_v33 = vmul.f32 0.5, %v674_v30  ;;  %v758_v35 = vmul.f32 %v661_v8, %v1363_v36  ;;  %v556_v46 = vpop.xlane.xlu0 %555  ;;  %vm679_vm9 = vweird.f32 %v1522_v16  ;;  %vm668_vm10 = vweird.f32 %v1516_v7 }
 0x1be   : > { %v550_v38 = vpop.xlane.xlu1 %549  ;;  %v570_v43 = vmul.f32 %v544_v26, %v1326_v5  ;;  %v625_v10 = vmul.f32 0.5, %v624_v32  ;;  %v772_v51 = vmul.f32 %v1477_v31, %v754_v56  ;;  %v574_v2 = vmul.f32 %v556_v46, %v1326_v5  ;;  %vm1602_vm13 = vmor %vm678_vm7, %vm679_vm9 }
 0x1bf   : > { %v572_v37 = vmul.f32 %v550_v38, %v1326_v5  ;;  %v676_v58 = vsub.f32 1.5, %v675_v33  ;;  %v776_v3 = vmul.f32 %v1477_v31, %v758_v35  ;;  %v807_v29 = vadd.f32 %v806_v48, %v805_v41 }
 0x1c0   : > { %v1099_v44 = vpop.eup %1098  ;;  %v626_v53 = vsub.f32 1.5, %v625_v10  ;;  %v1560_v42 = vadd.f32 1e-05, %v570_v43  ;;  %v790_v21 = vadd.f32 %v1503_v52, %v772_v51  ;;  %v814_v57 = vsel %vm226_vm1, %v793_v34, 0.0 }
 0x1c1   : > { %v663_v11 = vmul.f32 %v1099_v44, %v1516_v7  ;;  %v1563_v59 = vpop.eup %1100  ;;  %v1567_v36 = vadd.f32 1e-05, %v572_v37  ;;  %v677_v12 = vmul.f32 %v1522_v16, %v676_v58  ;;  %vm669_vm12 = vweird.f32 %v1099_v44 }
 0x1c2   : > { %v1569_v0 = vpop.eup %1102  ;;  %v627_v40 = vmul.f32 %v1097_v4, %v626_v53  ;;  %v683_v1 = vmul.f32 %v1563_v59, %v1520_v15  ;;  %1104 = vrsqrt.f32 %v1560_v42  ;;  %v1593_v22 = vadd.f32 1e-05, %v574_v2  ;;  %vm670_vm14 = vmor %vm668_vm10, %vm669_vm12 }
 0x1c3   : > { %v664_v60 = vmul.f32 %v1099_v44, %v663_v11  ;;  %v703_v50 = vmul.f32 %v1569_v0, %v1527_v17  ;;  %1106 = vrsqrt.f32 %v1567_v36  ;;  %v794_v27 = vadd.f32 %v1503_v52, %v776_v3 }
 0x1c4   : > { %v631_v9 = vsel %vm630_vm11, %v1097_v4, %v627_v40  ;;  %v684_v49 = vmul.f32 %v1563_v59, %v683_v1  ;;  %v808_v28 = vsel %vm226_vm1, %v790_v21, 0.0  ;;  %v681_v8 = vsel %vm1602_vm13, %v1522_v16, %v677_v12 }
 0x1c5   : > { %v665_v47 = vmul.f32 0.5, %v664_v60  ;;  %v755_v19 = vmul.f32 %v631_v9, %v1376_v45  ;;  %v704_v20 = vmul.f32 %v1569_v0, %v703_v50  ;;  %v553_v23 = vpop.xlane.xlu2 %552  ;;  %1108 = vrsqrt.f32 %v1593_v22 }
 0x1c6   : > { %v685_v4 = vmul.f32 0.5, %v684_v49  ;;  %v573_v43 = vmul.f32 %v553_v23, %v1326_v5  ;;  %v809_v34 = vadd.f32 %v808_v28, %v807_v29  ;;  %vm689_vm15 = vweird.f32 %v1563_v59 }
 0x1c7   : > { %v666_v18 = vsub.f32 1.5, %v665_v47  ;;  %v773_v56 = vmul.f32 %v1477_v31, %v755_v19  ;;  %v705_v38 = vmul.f32 0.5, %v704_v20  ;;  %v760_v48 = vmul.f32 %v681_v8, %v1370_v39  ;;  %v559_v20 = vpop.xlane.xlu1 %558 }
 0x1c8   : > { %v1105_v26 = vpop.eup %1104  ;;  %v686_v32 = vsub.f32 1.5, %v685_v4  ;;  %vm688_vm0 = vweird.f32 %v1520_v15  ;;  %v816_v46 = vsel %vm226_vm1, %v794_v27, 0.0  ;;  %vm709_vm3 = vweird.f32 %v1569_v0 }
 0x1c9   : > { %v667_v30 = vmul.f32 %v1099_v44, %v666_v18  ;;  %v791_v61 = vadd.f32 %v1503_v52, %v773_v56  ;;  %v693_v33 = vmul.f32 %v1105_v26, %v1560_v42  ;;  %v1620_v7 = vpop.eup %1106  ;;  %vm1632_vm2 = vmor %vm688_vm0, %vm689_vm15  ;;  %v1637_v15 = vadd.f32 1e-05, %v573_v43 }
 0x1ca   : > { %v687_v10 = vmul.f32 %v1563_v59, %v686_v32  ;;  %v713_v11 = vmul.f32 %v1620_v7, %v1567_v36  ;;  %vm698_vm4 = vweird.f32 %v1560_v42  ;;  %vm699_vm5 = vweird.f32 %v1105_v26 }
 0x1cb   : > { %v671_v41 = vsel %vm670_vm14, %v1099_v44, %v667_v30  ;;  %v810_v37 = vsel %vm226_vm1, %v791_v61, 0.0  ;;  %v694_v44 = vmul.f32 %v1105_v26, %v693_v33  ;;  %v1639_v58 = vpop.eup %1108  ;;  %v778_v47 = vmul.f32 %v1477_v31, %v760_v48  ;;  %vm700_vm7 = vmor %vm698_vm4, %vm699_vm5 }
 0x1cc   : > { %v759_v16 = vmul.f32 %v671_v41, %v1394_v63  ;;  %v811_v35 = vadd.f32 %v810_v37, %v809_v34  ;;  %v706_v63 = vsub.f32 1.5, %v705_v38  ;;  %v691_v40 = vsel %vm1632_vm2, %v1563_v59, %v687_v10 }
 0x1cd   : > { %v695_v39 = vmul.f32 0.5, %v694_v44  ;;  %v714_v1 = vmul.f32 %v1620_v7, %v713_v11  ;;  %v733_v21 = vmul.f32 %v1639_v58, %v1593_v22  ;;  %v761_v59 = vmul.f32 %v691_v40, %v1386_v55 }
 0x1ce   : > { %v777_v51 = vmul.f32 %v1477_v31, %v759_v16  ;;  %v813_v60 = vadd.f32 %v1544_v25, %v811_v35  ;;  %v707_v25 = vmul.f32 %v1569_v0, %v706_v63  ;;  %1110 = vrsqrt.f32 %v1637_v15 }
 0x1cf   : > { %v696_v3 = vsub.f32 1.5, %v695_v39  ;;  %v715_v9 = vmul.f32 0.5, %v714_v1  ;;  %v734_v49 = vmul.f32 %v1639_v58, %v733_v21  ;;  %vm708_vm6 = vweird.f32 %v1527_v17 }
 0x1d0   : > { %v795_v2 = vadd.f32 %v1503_v52, %v777_v51  ;;  %v815_v50 = vadd.f32 %v814_v57, %v813_v60  ;;  %vm1667_vm8 = vmor %vm708_vm6, %vm709_vm3  ;;  %vm719_vm9 = vweird.f32 %v1620_v7  ;;  %v1155_v27 = vmov 0.0  }
 0x1d1   : > { %v697_v12 = vmul.f32 %v1105_v26, %v696_v3  ;;  %v716_v18 = vsub.f32 1.5, %v715_v9  ;;  %v735_v4 = vmul.f32 0.5, %v734_v49  ;;  %v711_v23 = vsel %vm1667_vm8, %v1569_v0, %v707_v25  ;;  %227 = vst.msk [vmem:[%s1659_s27] sm:$0xff] %vm226_vm1, %v1155_v27 }
 0x1d2   : > { %v817_v19 = vadd.f32 %v816_v46, %v815_v50  ;;  %v818_v55 = vsel %vm226_vm1, %v795_v2, 0.0  ;;  %v796_v28 = vadd.f32 %v1503_v52, %v778_v47  ;;  %v779_v56 = vmul.f32 %v1477_v31, %v761_v59 }
 0x1d3   : > { %v701_v57 = vsel %vm700_vm7, %v1105_v26, %v697_v12  ;;  %v717_v42 = vmul.f32 %v1620_v7, %v716_v18  ;;  %v575_v45 = vmul.f32 %v559_v20, %v1326_v5  ;;  %vm718_vm10 = vweird.f32 %v1567_v36 }
 0x1d4   : > { %v762_v17 = vmul.f32 %v701_v57, %v1415_v14  ;;  %v819_v30 = vadd.f32 %v818_v55, %v817_v19  ;;  %v736_v0 = vsub.f32 1.5, %v735_v4  ;;  %v1111_v14 = vpop.eup %1110  ;;  %v763_v8 = vmul.f32 %v711_v23, %v1391_v62  ;;  %vm720_vm11 = vmor %vm718_vm10, %vm719_vm9 }
 0x1d5   : > { %v591_v32 = vadd.f32 1e-05, %v575_v45  ;;  %v721_v38 = vsel %vm720_vm11, %v1620_v7, %v717_v42  ;;  %v723_v61 = vmul.f32 %v1111_v14, %v1637_v15  ;;  %v820_v41 = vsel %vm226_vm1, %v796_v28, 0.0 }
 0x1d6   : > { %v780_v26 = vmul.f32 %v1477_v31, %v762_v17  ;;  %v797_v33 = vadd.f32 %v1503_v52, %v779_v56  ;;  %v821_v43 = vadd.f32 %v820_v41, %v819_v30  ;;  %v737_v36 = vmul.f32 %v1639_v58, %v736_v0 }
 0x1d7   : > { %1112 = vrsqrt.f32 %v591_v32  ;;  %vm739_vm12 = vweird.f32 %v1639_v58  ;;  %v724_v34 = vmul.f32 %v1111_v14, %v723_v61  ;;  %v781_v62 = vmul.f32 %v1477_v31, %v763_v8 }
 0x1d8   : > { %v798_v5 = vadd.f32 %v1503_v52, %v780_v26  ;;  %v764_v16 = vmul.f32 %v721_v38, %v1406_v6  ;;  %vm738_vm13 = vweird.f32 %v1593_v22  ;;  %v822_v7 = vsel %vm226_vm1, %v797_v33, 0.0  ;;  %v804_v57 = vld [vmem:[%s1659_s27] sm:$0xff] }
 0x1d9   : > { %v725_v10 = vmul.f32 0.5, %v724_v34  ;;  %vm740_vm14 = vmor %vm738_vm13, %vm739_vm12  ;;  %v823_v48 = vadd.f32 %v822_v7, %v821_v43  ;;  %vm729_vm15 = vweird.f32 %v1111_v14  ;;  %v799_v63 = vadd.f32 %v1503_v52, %v781_v62 }
 0x1da   : > { %v824_v37 = vsel %vm226_vm1, %v798_v5, 0.0  ;;  %v741_v44 = vsel %vm740_vm14, %v1639_v58, %v737_v36  ;;  %v782_v11 = vmul.f32 %v1477_v31, %v764_v16  ;;  %vm728_vm0 = vweird.f32 %v1637_v15 }
 0x1db   : > { %v726_v35 = vsub.f32 1.5, %v725_v10  ;;  %v825_v46 = vadd.f32 %v824_v37, %v823_v48  ;;  %v766_v53 = vmul.f32 %v741_v44, %v1412_v13  ;;  %vm730_vm2 = vmor %vm728_vm0, %vm729_vm15  ;;  %v826_v40 = vsel %vm226_vm1, %v799_v63, 0.0 }
 0x1dc   : > { %v800_v58 = vadd.f32 %v1503_v52, %v782_v11  ;;  %vm748_vm4 = vweird.f32 %v591_v32 }
 0x1dd   : > { %v1113_v51 = vpop.eup %1112  ;;  %v727_v6 = vmul.f32 %v1111_v14, %v726_v35  ;;  %v827_v2 = vadd.f32 %v826_v40, %v825_v46  ;;  %v784_v21 = vmul.f32 %v1477_v31, %v766_v53 }
 0x1de   : > { %v743_v22 = vmul.f32 %v1113_v51, %v591_v32  ;;  %vm749_vm3 = vweird.f32 %v1113_v51  ;;  %v828_v13 = vsel %vm226_vm1, %v800_v58, 0.0 }
 0x1df   : > { %v731_v39 = vsel %vm730_vm2, %v1111_v14, %v727_v6  ;;  %v829_v25 = vadd.f32 %v828_v13, %v827_v2  ;;  %v802_v59 = vadd.f32 %v1503_v52, %v784_v21  ;;  %vm750_vm5 = vmor %vm748_vm4, %vm749_vm3 }
 0x1e0   : > { %v744_v60 = vmul.f32 %v1113_v51, %v743_v22  ;;  %v765_v1 = vmul.f32 %v731_v39, %v1432_v24 }
 0x1e1   : > { %v832_v18 = vsel %vm226_vm1, %v802_v59, 0.0 }
 0x1e2   : > { %v745_v3 = vmul.f32 0.5, %v744_v60  ;;  %v783_v47 = vmul.f32 %v1477_v31, %v765_v1 }
 0x1e4   : > { %v746_v50 = vsub.f32 1.5, %v745_v3  ;;  %v801_v15 = vadd.f32 %v1503_v52, %v783_v47 }
 0x1e6   : > { %v747_v9 = vmul.f32 %v1113_v51, %v746_v50  ;;  %v830_v24 = vsel %vm226_vm1, %v801_v15, 0.0 }
 0x1e7   : > { %v831_v12 = vadd.f32 %v830_v24, %v829_v25 }
 0x1e8   : > { %v751_v49 = vsel %vm750_vm5, %v1113_v51, %v747_v9 }
 0x1e9   : > { %v767_v19 = vmul.f32 %v751_v49, %v1427_v54  ;;  %v833_v55 = vadd.f32 %v832_v18, %v831_v12 }
 0x1eb   : > { %v785_v20 = vmul.f32 %v1477_v31, %v767_v19 }
 0x1ed   : > { %v803_v29 = vadd.f32 %v1503_v52, %v785_v20 }
 0x1ef   : > { %v834_v4 = vsel %vm226_vm1, %v803_v29, 0.0 }
 0x1f0   : > { %v835_v23 = vadd.f32 %v834_v4, %v833_v55 }
 0x1f2   : > { %v836_v17 = vadd.f32 %v835_v23, %v804_v57 }
 0x1f4   : > { %837 = vst.msk [vmem:[%s1659_s27] sm:$0xff] %vm226_vm1, %v836_v17 }
 0x1f5 PF: > { %s13_s16 = sadd.s32 1, %s1152_s16   ;;  %s1752_s12 = smov %s1144_s14 }
 0x1f6   : > { %p10_p8 = scmp.ge.s32.totalorder %s13_s16, 6   ;;  %s1753_s13 = smov %s1148_s15 }
 0x1f7   : > { %s1754_s14 = smov %s1757_s17  ;;  %s1755_s15 = smov %s1761_s18 }
 0x1f8   :  { %12 = sbr.rel (!%p10_p8) target bundleno = 3 (0x3), region = 66 }

</bundles_post_ra>
